<compile_context>
chip_gen: v7x
topology: tpu7x:2x2x1
jax: 0.10.0
libtpu: 0.0.40
codegen_flags: <defaults>
</compile_context>

<pallas_src>
import jax
import jax.numpy as jnp
from jax.experimental import pallas as pl
from jax.experimental.pallas import tpu as pltpu

_N_SEED_PROGRAMS = 2   # seed both TensorCores on v7x; benign repeat on v5e/v6e (1 TC)
_STATE_ROWS = 8        # per-program output block is (8, 128): legal, lane-dense tile
_STATE_COLS = 128


def _make_reset_seed_kernel(use_hw_prng: bool):
    """Build the seed-only kernel body. `use_hw_prng` is a trace-time constant."""

    def kernel(seed_ref, state_ref):
        if use_hw_prng:
            # Reseed this core's hardware PRNG: the closest TPU analogue of
            # torch.manual_seed for in-kernel stochastic ops (dropout,
            # stochastic rounding) that execute after this point.
            pltpu.prng_seed(seed_ref[0])
        # Echo the seed into the (8,128) output block: explicit seed-state
        # carrier + guarantees the call has a live result.
        state_ref[...] = jnp.full((_STATE_ROWS, _STATE_COLS), seed_ref[0],
                                  dtype=jnp.int32)

    return kernel


def reset_seed(seed) -> jax.Array:
    """Seed-only Pallas call (no tensor traffic).

    Returns a tiny int32 buffer filled with `seed` (explicit RNG-state carrier).
    """
    seed_arr = jnp.atleast_1d(jnp.asarray(seed, dtype=jnp.int32))[:1]
    # pltpu.prng_seed only lowers under Mosaic (real TPU); skip it elsewhere
    # (e.g. CPU interpret fallback) so the script always runs cleanly.
    use_hw_prng = jax.default_backend() == "tpu"

    return pl.pallas_call(
        _make_reset_seed_kernel(use_hw_prng),
        out_shape=jax.ShapeDtypeStruct(
            (_N_SEED_PROGRAMS * _STATE_ROWS, _STATE_COLS), jnp.int32),
        grid_spec=pltpu.PrefetchScalarGridSpec(
            num_scalar_prefetch=1,                    # seed lands in SMEM
            grid=(_N_SEED_PROGRAMS,),
            in_specs=[],                              # no tensor inputs at all
            out_specs=pl.BlockSpec((_STATE_ROWS, _STATE_COLS),
                                   lambda i, seed: (i, 0)),
        ),
        compiler_params=pltpu.CompilerParams(
            dimension_semantics=("parallel",),        # both TCs reseed on v7x
            has_side_effects=True,                    # never DCE the reseed
        ),
    )(seed_arr)


def reset_seed_forward(x, seed):
    """Pallas implementation of ResetSeed.forward: reseed, then return x unchanged.

    The data path is a no-op (no copy, no extra HBM traffic) -- the identity is
    free; only the tiny seed kernel runs. Works for any shape/size of x,
    including scalars (no size-based early-out that would skip the side effect).
    """
    _ = reset_seed(seed)   # side effect only; state buffer intentionally unused
    return x


if __name__ == "__main__":
    key = jax.random.PRNGKey(0)
    batch, hidden = 8, 32
    x = jax.random.normal(key, (batch, hidden), dtype=jnp.float32)

    # Forward pass: identity on x + reseed side effect.
    out = reset_seed_forward(x, seed=42)
    out = jax.block_until_ready(out)

    # Also run the seed kernel directly and check the exported state.
    state = jax.block_until_ready(reset_seed(42))

    assert out.shape == x.shape and out.dtype == x.dtype
    assert jnp.array_equal(out, x), "ResetSeed must be an identity on x"
    assert state.shape == (_N_SEED_PROGRAMS * _STATE_ROWS, _STATE_COLS)
    assert bool(jnp.all(state == 42)), "seed state buffer must carry the seed"

    print("KERNEL_OK")
</pallas_src>

<mosaic_0001>
module attributes {stable_mosaic.version = 11 : i64} {
  func.func @kernel(%arg0: i32, %arg1: memref<1xi32, #tpu.memory_space<smem>>, %arg2: memref<8x128xi32, #tpu.memory_space<vmem>>) attributes {dimension_semantics = [#tpu.dimension_semantics<parallel>], iteration_bounds = array<i64: 2>, scalar_prefetch = 1 : i64, scratch_operands = 0 : i64, tpu.core_type = #tpu.core_type<tc>, window_params = [{transform_indices = @transform_0, window_bounds = array<i64: 8, 128>}]} {
    %c0 = arith.constant 0 : index
    %0 = memref.load %arg1[%c0] : memref<1xi32, #tpu.memory_space<smem>>
    %1 = vector.broadcast %0 : i32 to vector<8x128xi32>
    %c0_0 = arith.constant 0 : index
    %c0_1 = arith.constant 0 : index
    %2 = vector.load %arg2[%c0_0, %c0_1] : memref<8x128xi32, #tpu.memory_space<vmem>>, vector<8x128xi32>
    tpu.vector_store %arg2[%c0_0, %c0_1], %1 {strides = array<i32>} : memref<8x128xi32, #tpu.memory_space<vmem>>, vector<8x128xi32>,
    return
  }
  func.func @transform_0(%arg0: i32, %arg1: memref<1xi32, #tpu.memory_space<smem>>) -> (i32, i32) {
    %c0_i32 = arith.constant 0 : i32
    %c0_i32_0 = arith.constant 0 : i32
    return %arg0, %c0_i32 : i32, i32
  }
}

</mosaic_0001>

<bundles_post_ra>
// kernel: tpu_custom_call.1
= control target key start
LH: loop header
LB: loop body
LE: loop exit
PB: predicated region body
PF: predicated region fallthrough
CT: control target
= control target key end

     0   :  { %s298_s0 = inlined_call_operand.<no memory space> [shape: s32[1], index: 0, kind: input, shape index: {}]   ;;  %s299_s1 = inlined_call_operand.hbm [shape: s32[16,128], index: 1, kind: output, shape index: {}]  }
   0x1   :  { %6 = sst [smem:[#allocation3]] %s298_s0 }
   0x2   :  { %7 = vsyncpa [#allocation5], 0 }
   0x3   :  { %9 = vsyncpa [#allocation5 + $0x1], 0  ;;  %s217_s8 = smov 0   ;;  %s219_s9 = smov 0  }
   0x4   :  { %s221_s10 = smov 0  }
   0x5 LB: > { %s108_s0 = sadd.s32 4294967295, %s201_s10   ;;  %s234_s11 = sadd.s32 1, %s201_s10   ;;  %s201_s10 = sphi %s221_s10, %s304_s10   ;;  %s197_s9 = sphi %s219_s9, %s303_s9   ;;  %s193_s8 = sphi %s217_s8, %s302_s8  }
   0x6   : > { %s18_s12 = ssub.s32 %s201_s10, %s234_s11  ;;  %s21_s13 = sadd.s32 1, %s197_s9 }
   0x7   : > { %p19_p0 = scmp.eq.s32.totalorder %s18_s12, 0  ;;  %p109_p1 = scmp.ne.s32.totalorder %s18_s12, 0 }
   0x8   : > { %p25_p2 = scmp.eq.s32.totalorder %s201_s10, 1  ;;  %p30_p3 = scmp.ne.s32.totalorder %s197_s9, %s193_s8 }
   0x9   : > { %s243_s14 = scalar_select %p19_p0, %s197_s9, %s21_s13  }
   0xa   : > { %p245_p4 = por %p109_p1, %p25_p2  ;;  %p31_p5 = scmp.eq.s32.totalorder %s108_s0, 1 }
   0xb   : > { %p110_p7 = scmp.ge.s32.totalorder %s201_s10, 2 }
   0xc   : > { %p249_p6 = por %p31_p5, %p30_p3  ;;  %s45_s17 = sand.u32 (!%p110_p7), 1, %s197_s9  }
   0xd   : > { %40 = sbr.rel (%p110_p7) target bundleno = 39 (0x27), region = 12  ;;  %s48_s18 = sld [smem:[#allocation3]] (!%p110_p7) }
   0xe   : > { %s111_s19 = sshll.u32 (!%p110_p7), %s45_s17, 3  ;;  %s113_s20 = sshll.u32 (!%p110_p7), %s201_s10, 7 }
   0xf   : > { %s47_s21 = scalar_lea.vmem (!%p110_p7), [#allocation4], %s111_s19  ;;  %s261_s25 = scalar_lea.hbm (!%p110_p7), %s299_s1, %s113_s20 }
  0x10   : > { %s65_s22 = sshll.u32 (!%p110_p7), %s47_s21, 4  ;;  %s52_s26 = scalar_lea.sflag (!%p110_p7), [#allocation5], %s45_s17  ;;  %s256_s22 = int_to_ptr.vmem [resolvable:$true] %s65_s22 }
  0x11   : > { %s147_s27 = scalar_lea.vmem (!%p110_p7), %s256_s22, 128  ;;  %s203_s28 = smov (!%p110_p7), [#allocation4]  }
  0x12   : > { %p148_p8 = scmp.ne.s32.totalorder (!%p110_p7), %s256_s22, %s147_s27  ;;  %s151_s29 = sshll.u32 (!%p110_p7), %s203_s28, 4  ;;  %s152_s29 = int_to_ptr.vmem [resolvable:$false] %s151_s29 }
  0x13   : > { %v49_v0 = vstv (!%p110_p7), %s48_s18  ;;  %s153_s30 = scalar_lea.vmem (!%p110_p7), %s152_s29, 256  ;;  %p154_p11 = scmp.lt.s32.totalorder (!%p110_p7), %s256_s22, %s152_s29 }
  0x14   : > { %50 = vst [vmem:[%s47_s21] sm:$0xff] %v49_v0  ;;  %p149_p9 = pnand %p148_p8, %p245_p4  ;;  %p155_p12 = scmp.lt.s32.totalorder %s153_s30, %s147_s27 }
  0x16   : > { %p150_p10 = pneg %p149_p9  ;;  %p156_p13 = por %p155_p12, %p154_p11 }
  0x18   : > { %p157_p0 = pnand %p156_p13, %p150_p10 }
  0x1a   : > { %160 = shalt.err (!%p157_p0)
}
  0x1b   : > { %s161_s2 = scalar_lea.hbm %s261_s25, 128  ;;  %s165_s5 = scalar_lea.hbm %s299_s1, 256 }
  0x1c   : > { %p162_p1 = scmp.ne.s32.totalorder %s261_s25, %s161_s2  ;;  %p166_p5 = scmp.lt.u32.totalorder %s261_s25, %s299_s1 }
  0x1d   : > { %p167_p7 = scmp.lt.u32.totalorder %s165_s5, %s161_s2  ;;  %p169_p9 = scmp.lt.u32.totalorder %s161_s2, %s261_s25 }
  0x1e   : > { %p163_p2 = pnand %p162_p1, %p245_p4 }
  0x1f   : > { %p168_p8 = por %p167_p7, %p166_p5 }
  0x20   : > { %p164_p3 = pneg %p163_p2 }
  0x21   : > { %p170_p10 = por %p169_p9, %p168_p8 }
  0x23   : > { %p171_p11 = pnand %p170_p10, %p164_p3 }
  0x25   : > { %174 = shalt.err (!%p171_p11)
}
  0x26   : > { %116 = dma.vmem_to_hbm [thread:$0]  (%p245_p4), %s256_s22, 128, %s261_s25, %s52_s26  }
  0x27 PF: > { %p122_p12 = scmp.ge.s32.totalorder %s201_s10, 1  ;;  %s77_s0 = sand.u32 1, %s193_s8  }
  0x28   : > { %s78_s12 = scalar_lea.sflag [#allocation5], %s77_s0 }
  0x29   : > { %p119_p13 = pnand %p122_p12, %p249_p6 }
  0x2b   : > { %188 = dma.done.wait (!%p119_p13), %s78_s12, 128  }
  0x2c   : > { %190 = vsyncadd (!%p119_p13), %s78_s12, 4294967168  ;;  %p12_p0 = scmp.ge.s32.totalorder %s234_s11, 3   ;;  %s302_s8 = smov %s197_s9 }
  0x2d   : > { %s303_s9 = smov %s243_s14  ;;  %s304_s10 = smov %s234_s11 }
  0x2e   :  { %14 = sbr.rel (!%p12_p0) target bundleno = 5 (0x5), region = 44 }
  0x35   :  { %83 = vsyncpa [#allocation5], 1 }
  0x36   :  { %85 = vsyncpa [#allocation5 + $0x1], 1 }

</bundles_post_ra>
